<compile_context>
chip_gen: v7x
topology: tpu7x:2x2x1
jax: 0.10.0
libtpu: 0.0.40
codegen_flags: <defaults>
</compile_context>

<pallas_src>
import functools

import jax
import jax.numpy as jnp
import numpy as np
from jax.experimental import pallas as pl
from jax.experimental.pallas import tpu as pltpu


def _round_up(x, m):
    return -(-x // m) * m


def _sine_activation_kernel(tau_ref, c_ref, o_ref, *, pack):
    # tau_ref: (TM, pack) f32          packed time values
    # c_ref:   (pack + 2, lanes) f32   rows [0, pack): block-diag weights
    #                                  row  pack     : tiled bias
    #                                  row  pack + 1 : sin mask (1=sin, 0=linear)
    # o_ref:   (TM, lanes)             lane-dense packed output
    w_mat = c_ref[:pack, :]                          # (pack, lanes)
    bias = c_ref[pack:pack + 1, :]                   # (1, lanes)
    sin_mask = c_ref[pack + 1:pack + 2, :] != 0.0    # (1, lanes) bool
    z = jnp.dot(tau_ref[...], w_mat, preferred_element_type=jnp.float32) + bias
    # TODO(synk): if a bundle dump shows VALU-bound on v6e/v7x, replace
    # jnp.sin with a reduced-range / bf16 polynomial (sin is a VPU
    # polynomial, not an EUP op).
    o_ref[...] = jnp.where(sin_mask, jnp.sin(z), z).astype(o_ref.dtype)


def sine_activation(tau, w, b, w0, b0, *, tile_rows=2048, out_dtype=jnp.float32):
    """tau: (B, L). Returns (B, L, out_features) in `out_dtype` (default f32)."""
    B, L = tau.shape
    F = w.shape[1] + 1          # out_features
    N = B * L
    out_itemsize = np.dtype(out_dtype).itemsize

    # ---- lane packing: present a lane-dense (multiple of 128) output ----
    if F <= 128 and 128 % F == 0:
        pack, lanes = 128 // F, 128            # exact: free row-major view back
    elif F % 128 == 0:
        pack, lanes = 1, F                     # exact
    else:
        pack, lanes = 1, _round_up(F, 128)     # dead lanes, sliced off after
    exact = (pack * F == lanes)

    R = -(-N // pack)                          # packed row count

    # ---- grid sizing: large blocks, minimal padding, >=2 steps when big ----
    num_steps = -(-R // max(int(tile_rows), 8))
    # v7x has 2 TensorCores: a single big block would leave one idle.
    if num_steps == 1 and R * lanes * out_itemsize > (1 << 20):
        num_steps = 2
    if num_steps > 1 and num_steps % 2 == 1:
        num_steps += 1                         # even step count balances the TCs
    if num_steps == 1:
        tile_eff = R                           # single full-array block ((8,128)-exempt)
    else:
        tile_eff = _round_up(-(-R // num_steps), 8)
    R_total = num_steps * tile_eff             # padding < 8 * num_steps rows
    N_total = R_total * pack

    tau_flat = tau.reshape(N).astype(jnp.float32)
    if N_total > N:
        tau_flat = jnp.pad(tau_flat, (0, N_total - N))
    tau_packed = tau_flat.reshape(R_total, pack)

    # ---- fused constants: block-diag weights | tiled bias | sin-lane mask ----
    w_full = jnp.concatenate([w, w0], axis=1).astype(jnp.float32)      # (1, F)
    b_full = jnp.concatenate([b, b0], axis=0).astype(jnp.float32)      # (F,)
    mask_row = jnp.concatenate(
        [jnp.ones((F - 1,), jnp.float32), jnp.zeros((1,), jnp.float32)])
    w_block = jnp.kron(jnp.eye(pack, dtype=jnp.float32), w_full)       # (pack, pack*F)
    b_tiled = jnp.tile(b_full, pack)[None, :]                          # (1, pack*F)
    mask_tiled = jnp.tile(mask_row, pack)[None, :]                     # (1, pack*F)
    if not exact:                                                      # zero dead lanes
        padc = lanes - pack * F
        w_block = jnp.pad(w_block, ((0, 0), (0, padc)))
        b_tiled = jnp.pad(b_tiled, ((0, 0), (0, padc)))
        mask_tiled = jnp.pad(mask_tiled, ((0, 0), (0, padc)))
    consts = jnp.concatenate([w_block, b_tiled, mask_tiled], axis=0)   # (pack+2, lanes)

    # Double-buffered in+out VMEM footprint; raise scoped limit only if needed
    # (guards v5e's 16 MiB default when users pass very large tile_rows).
    vmem_needed = (2 * tile_eff * (lanes * out_itemsize + pack * 4)
                   + consts.size * 4)
    compiler_kwargs = dict(dimension_semantics=("parallel",))
    if vmem_needed > (12 << 20):
        compiler_kwargs["vmem_limit_bytes"] = int(min(vmem_needed + (4 << 20),
                                                      100 << 20))

    out_packed = pl.pallas_call(
        functools.partial(_sine_activation_kernel, pack=pack),
        out_shape=jax.ShapeDtypeStruct((R_total, lanes), out_dtype),
        grid_spec=pltpu.PrefetchScalarGridSpec(
            num_scalar_prefetch=0,
            grid=(num_steps,),
            in_specs=[
                pl.BlockSpec((tile_eff, pack), lambda i: (i, 0)),
                pl.BlockSpec((pack + 2, lanes), lambda i: (0, 0)),
            ],
            out_specs=pl.BlockSpec((tile_eff, lanes), lambda i: (i, 0)),
        ),
        compiler_params=pltpu.CompilerParams(**compiler_kwargs),
    )(tau_packed, consts)

    if exact:
        out = out_packed.reshape(R_total * pack, F)[:N]   # free row-major view
    else:
        out = out_packed[:N, :F]                          # drop dead lanes
    return out.reshape(B, L, F)


def sine_activation_ref(tau, w, b, w0, b0):
    """Pure-JAX reference matching the PyTorch forward exactly."""
    tau_u = tau[..., None]                       # (B, L, 1)
    v1 = jnp.sin(jnp.matmul(tau_u, w) + b)       # (B, L, F-1)
    v2 = jnp.matmul(tau_u, w0) + b0              # (B, L, 1)
    return jnp.concatenate([v1, v2], axis=-1)


if __name__ == "__main__":
    # Module config: in_features = 1 (implied by unsqueeze(-1)), out_features = 32.
    in_features = 1
    out_features = 32

    key = jax.random.PRNGKey(0)
    k_tau, k_w0, k_b0, k_w, k_b, k_tau2, k_w2, k_b2 = jax.random.split(key, 8)

    w0 = jax.random.normal(k_w0, (in_features, 1), dtype=jnp.float32)
    b0 = jax.random.normal(k_b0, (1,), dtype=jnp.float32)
    w = jax.random.normal(k_w, (in_features, out_features - 1), dtype=jnp.float32)
    b = jax.random.normal(k_b, (out_features - 1,), dtype=jnp.float32)

    # 1) Small demo shape from the module (single full-array block path).
    tau = jax.random.normal(k_tau, (2, 8), dtype=jnp.float32)
    out = jax.block_until_ready(sine_activation(tau, w, b, w0, b0))
    ref = sine_activation_ref(tau, w, b, w0, b0)
    np.testing.assert_allclose(np.asarray(out), np.asarray(ref), rtol=1e-5, atol=1e-5)

    # 2) Non-divisible N exercising the padded, multi-step (parallel) grid path
    #    with minimal-padding / even-step-count tiling.
    tau2 = jax.random.normal(k_tau2, (4, 777), dtype=jnp.float32)
    out2 = jax.block_until_ready(sine_activation(tau2, w, b, w0, b0, tile_rows=128))
    ref2 = sine_activation_ref(tau2, w, b, w0, b0)
    np.testing.assert_allclose(np.asarray(out2), np.asarray(ref2), rtol=1e-5, atol=1e-5)

    # 3) bf16 output path (halved HBM write traffic; compute stays f32).
    out2_bf16 = jax.block_until_ready(
        sine_activation(tau2, w, b, w0, b0, tile_rows=128, out_dtype=jnp.bfloat16))
    np.testing.assert_allclose(np.asarray(out2_bf16, dtype=np.float32),
                               np.asarray(ref2), rtol=5e-2, atol=5e-2)

    # 4) out_features that does NOT divide 128 -> lane-padded (still unmasked
    #    128-lane stores), columns sliced off after the call.
    F2 = 20
    w_nd = jax.random.normal(k_w2, (in_features, F2 - 1), dtype=jnp.float32)
    b_nd = jax.random.normal(k_b2, (F2 - 1,), dtype=jnp.float32)
    out3 = jax.block_until_ready(sine_activation(tau, w_nd, b_nd, w0, b0))
    ref3 = sine_activation_ref(tau, w_nd, b_nd, w0, b0)
    np.testing.assert_allclose(np.asarray(out3), np.asarray(ref3), rtol=1e-5, atol=1e-5)

    print("KERNEL_OK")
</pallas_src>

<mosaic_0001>
module attributes {stable_mosaic.version = 11 : i64} {
  func.func @_sine_activation_kernel(%arg0: i32, %arg1: memref<4x4xf32, #tpu.memory_space<vmem>>, %arg2: memref<6x128xf32, #tpu.memory_space<vmem>>, %arg3: memref<4x128xf32, #tpu.memory_space<vmem>>) attributes {dimension_semantics = [#tpu.dimension_semantics<parallel>], iteration_bounds = array<i64: 1>, scalar_prefetch = 0 : i64, scratch_operands = 0 : i64, tpu.core_type = #tpu.core_type<tc>, window_params = [{transform_indices = @transform_0, window_bounds = array<i64: 4, 4>}, {pipeline_mode = #tpu.pipeline_mode<synchronous>, transform_indices = @transform_1, window_bounds = array<i64: 6, 128>}, {transform_indices = @transform_2, window_bounds = array<i64: 4, 128>}]} {
    %c0 = arith.constant 0 : index
    %c0_0 = arith.constant 0 : index
    %0 = vector.load %arg2[%c0, %c0_0] : memref<6x128xf32, #tpu.memory_space<vmem>>, vector<4x128xf32>
    %c4 = arith.constant 4 : index
    %c0_1 = arith.constant 0 : index
    %1 = vector.load %arg2[%c4, %c0_1] : memref<6x128xf32, #tpu.memory_space<vmem>>, vector<1x128xf32>
    %c5 = arith.constant 5 : index
    %c0_2 = arith.constant 0 : index
    %2 = vector.load %arg2[%c5, %c0_2] : memref<6x128xf32, #tpu.memory_space<vmem>>, vector<1x128xf32>
    %cst = arith.constant 0.000000e+00 : f32
    %3 = vector.broadcast %cst : f32 to vector<1x128xf32>
    %4 = arith.cmpf one, %2, %3 : vector<1x128xf32>
    %c0_3 = arith.constant 0 : index
    %c0_4 = arith.constant 0 : index
    %5 = vector.load %arg1[%c0_3, %c0_4] : memref<4x4xf32, #tpu.memory_space<vmem>>, vector<4x4xf32>
    %cst_5 = arith.constant dense<0.000000e+00> : vector<4x128xf32>
    %6 = tpu.matmul %5, %0, %cst_5 {dimension_numbers = #tpu.dot_dimension_numbers<[1], [0], [0], [1], [0, 0, 1, 1], [], []>} : vector<4x4xf32>, vector<4x128xf32>, vector<4x128xf32> -> vector<4x128xf32>
    %7 = vector.broadcast %1 : vector<1x128xf32> to vector<4x128xf32>
    %8 = arith.addf %6, %7 : vector<4x128xf32>
    %9 = math.sin %8 : vector<4x128xf32>
    %10 = vector.shape_cast %4 : vector<1x128xi1> to vector<1x128xi1>
    %11 = vector.broadcast %10 : vector<1x128xi1> to vector<4x128xi1>
    %12 = arith.select %11, %9, %8 : vector<4x128xi1>, vector<4x128xf32>
    %c0_6 = arith.constant 0 : index
    %c0_7 = arith.constant 0 : index
    %13 = vector.load %arg3[%c0_6, %c0_7] : memref<4x128xf32, #tpu.memory_space<vmem>>, vector<4x128xf32>
    tpu.vector_store %arg3[%c0_6, %c0_7], %12 {strides = array<i32>} : memref<4x128xf32, #tpu.memory_space<vmem>>, vector<4x128xf32>,
    return
  }
  func.func @transform_0(%arg0: i32) -> (i32, i32) {
    %c0_i32 = arith.constant 0 : i32
    %c0_i32_0 = arith.constant 0 : i32
    return %arg0, %c0_i32 : i32, i32
  }
  func.func @transform_1(%arg0: i32) -> (i32, i32) {
    %c0_i32 = arith.constant 0 : i32
    %c0_i32_0 = arith.constant 0 : i32
    %c0_i32_1 = arith.constant 0 : i32
    return %c0_i32, %c0_i32_0 : i32, i32
  }
  func.func @transform_2(%arg0: i32) -> (i32, i32) {
    %c0_i32 = arith.constant 0 : i32
    %c0_i32_0 = arith.constant 0 : i32
    return %arg0, %c0_i32 : i32, i32
  }
}

</mosaic_0001>

<bundles_post_ra>
// kernel: tpu_custom_call.1
= control target key start
LH: loop header
LB: loop body
LE: loop exit
PB: predicated region body
PF: predicated region fallthrough
CT: control target
= control target key end

     0   :  { %7 = vsyncpa [#allocation3], 0  ;;  %s442_s0 = inlined_call_operand.hbm [shape: f32[4,4], index: 0, kind: input, shape index: {}]   ;;  %s443_s1 = inlined_call_operand.hbm [shape: f32[6,128], index: 1, kind: input, shape index: {}]   ;;  %s444_s2 = inlined_call_operand.hbm [shape: f32[4,128], index: 2, kind: output, shape index: {}]  }
   0x1   :  { %8 = vsyncpa [#allocation6], 0 }
   0x2   :  { %9 = vsyncpa [#allocation4], 0  ;;  %s357_s9 = smov [#allocation2]   ;;  %s358_s11 = smov [#allocation5]  }
   0x3   :  { %s16_s10 = sshll.u32 %s357_s9, 4  ;;  %s26_s12 = sshll.u32 %s358_s11, 4  ;;  %s17_s10 = int_to_ptr.vmem [resolvable:$true] %s16_s10  ;;  %s27_s12 = int_to_ptr.vmem [resolvable:$true] %s26_s12 }
   0x4   :  { %s285_s15 = scalar_lea.hbm %s442_s0, 64 }
   0x5   :  { %p286_p0 = scmp.ne.s32.totalorder %s442_s0, %s285_s15  ;;  %p289_p1 = scmp.lt.u32.totalorder %s285_s15, %s442_s0 }
   0x7   :  { %p291_p2 = pnand %p289_p1, %p286_p0 }
   0x9   :  { %294 = shalt.err (!%p291_p2)
}
   0xa   :  { %s295_s20 = scalar_lea.vmem %s17_s10, 64  ;;  %p300_p4 = scmp.lt.s32.totalorder %s17_s10, %s17_s10 }
   0xb   :  { %p296_p3 = scmp.ne.s32.totalorder %s17_s10, %s295_s20  ;;  %p301_p5 = scmp.lt.s32.totalorder %s295_s20, %s295_s20 }
   0xd   :  { %p302_p6 = por %p301_p5, %p300_p4 }
   0xf   :  { %p303_p7 = pnand %p302_p6, %p296_p3 }
  0x11   :  { %306 = shalt.err (!%p303_p7)
}
  0x12   :  { %19 = dma.hbm_to_vmem [thread:$0]  %s442_s0, 64, %s17_s10, [#allocation3]  }
  0x13   :  { %s307_s25 = scalar_lea.hbm %s443_s1, 128 }
  0x14   :  { %p308_p8 = scmp.ne.s32.totalorder %s443_s1, %s307_s25  ;;  %p311_p9 = scmp.lt.u32.totalorder %s307_s25, %s443_s1 }
  0x16   :  { %p313_p10 = pnand %p311_p9, %p308_p8 }
  0x18   :  { %316 = shalt.err (!%p313_p10)
}
  0x19   :  { %s317_s30 = scalar_lea.vmem %s27_s12, 128  ;;  %p322_p12 = scmp.lt.s32.totalorder %s27_s12, %s27_s12 }
  0x1a   :  { %p318_p11 = scmp.ne.s32.totalorder %s27_s12, %s317_s30  ;;  %p323_p13 = scmp.lt.s32.totalorder %s317_s30, %s317_s30 }
  0x1c   :  { %p324_p0 = por %p323_p13, %p322_p12 }
  0x1e   :  { %p325_p1 = pnand %p324_p0, %p318_p11 }
  0x20   :  { %328 = shalt.err (!%p325_p1)
}
  0x21   :  { %29 = dma.hbm_to_vmem [thread:$0]  %s443_s1, 128, %s27_s12, [#allocation6]  }
  0x22   :  { %351 = dma.done.wait [#allocation3], 64  }
  0x23   :  { %352 = vsyncadd [#allocation3], 4294967232 }
  0x24   :  { %353 = dma.done.wait [#allocation6], 128  }
  0x25   :  { %354 = vsyncadd [#allocation6], 4294967168  ;;  %v359_v0 = vmov 0.0   ;;  %vm360_vm0 = vmmov 0   ;;  %vm49_vm1 = vcmask 1043456   ;;  %vm45_vm2 = vcmask 31744  }
  0x26   :  { %260 = vmatprep.subr.mxu0 %v359_v0  ;;  %262 = vmatprep.mubr.msk.f32.mxu0 %vm360_vm0, %v359_v0  ;;  %v36_v1 = vld [vmem:[#allocation5] sm:$0xf]  ;;  %v40_v2 = vld [vmem:[#allocation2] sm:$0xf]  ;;  %v251_v3 = vld [vmem:[#allocation5 + $0x4] ss:$0 sm:$0xff] }
  0x27   :  { %261 = vmatpush3.msk.msra.mxu0 %vm49_vm1, %v36_v1  ;;  %v361_v18 = vmov 2102212464   ;;  %v362_v20 = vmov 920167782   ;;  %v363_v24 = vmov 1326507024  }
  0x28   :  { %263 = vmatmul.mubr.msk.f32.vlgmr.msra.gmra.mrb[0].mxu0 %vm45_vm2, %v40_v2  ;;  %v364_v26 = vmov 683565275   ;;  %v365_v28 = vmov 2475754826   ;;  %v366_v31 = vmov 2131351028  }
  0x29   :  { %s368_s1 = smov [#allocation7]  }
  0x2a   :  { %s241_s4 = sshll.u32 %s368_s1, 4  ;;  %s242_s4 = int_to_ptr.vmem [resolvable:$true] %s241_s4 }
  0x2b   :  { %s329_s5 = scalar_lea.vmem %s242_s4, 64  ;;  %p334_p3 = scmp.lt.s32.totalorder %s242_s4, %s242_s4 }
  0x2c   :  { %p330_p2 = scmp.ne.s32.totalorder %s242_s4, %s329_s5  ;;  %p335_p4 = scmp.lt.s32.totalorder %s329_s5, %s329_s5 }
  0x2e   :  { %p336_p5 = por %p335_p4, %p334_p3 }
  0x30   :  { %p337_p6 = pnand %p336_p5, %p330_p2 }
  0xfb   :  { %v119_v4 = vpop.f32.mrb[0].mxu0 }
  0xfc   :  { %v408_v5 = vadd.f32 %v251_v3, %v119_v4  ;;  %v264_v6 = vpop.f32.mrb[1].mxu0 }
  0xfe   :  { %v126_v7 = vand.u32 2139095040, %v408_v5  ;;  %v123_v8 = vand.u32 2147483647, %v408_v5  ;;  %vm125_vm10 = vcmp.lt.s32.totalorder %v408_v5, 0  ;;  %vm215_vm1 = vweird.f32 %v408_v5 }
 0x100   :  { %v127_v9 = vshrl.u32 %v126_v7, 23  ;;  %v130_v11 = vand.u32 8388607, %v123_v8  ;;  %vm124_vm11 = vcmp.le.f32.partialorder %v123_v8, 0.7853982 }
 0x102   :  { %v254_v10 = vadd.s32 4294967169, %v127_v9  ;;  %v131_v14 = vor.u32 8388608, %v130_v11 }
 0x104   :  { %v133_v12 = vadd.s32 1, %v254_v10  ;;  %v171_v22 = vshll.u32 %v131_v14, 8 }
 0x106   :  { %vm134_vm3 = vcmp.gt.s32.totalorder %v133_v12, 0 }
 0x107   :  { %v135_v13 = vsel %vm134_vm3, %v133_v12, 0 }
 0x108   :  { %v137_v15 = vand.u32 31, %v135_v13  ;;  %v136_v16 = vshrl.u32 %v135_v13, 5 }
 0x10a   :  { %v138_v17 = vsub.s32 32, %v137_v15  ;;  %v149_v19 = vshll.u32 %v361_v18, %v137_v15  ;;  %v152_v21 = vshll.u32 %v362_v20, %v137_v15  ;;  %v140_v27 = vshll.u32 %v364_v26, %v137_v15 }
 0x10b   :  { %v143_v30 = vshll.u32 %v365_v28, %v137_v15  ;;  %v146_v33 = vshll.u32 %v366_v31, %v137_v15  ;;  %vm158_vm4 = vcmp.lt.s32.totalorder %v136_v16, 4  ;;  %vm155_vm5 = vcmp.lt.s32.totalorder %v136_v16, 1 }
 0x10c   :  { %v150_v23 = vshrl.u32 %v362_v20, %v138_v17  ;;  %v153_v25 = vshrl.u32 %v363_v24, %v138_v17  ;;  %v141_v29 = vshrl.u32 %v365_v28, %v138_v17  ;;  %v144_v32 = vshrl.u32 %v366_v31, %v138_v17 }
 0x10d   :  { %v147_v34 = vshrl.u32 %v361_v18, %v138_v17  ;;  %v139_v38 = vshrl.u32 %v364_v26, %v138_v17  ;;  %vm156_vm6 = vcmp.lt.s32.totalorder %v136_v16, 2  ;;  %vm157_vm7 = vcmp.lt.s32.totalorder %v136_v16, 3  ;;  %v38_v26 = vld [vmem:[#allocation5 + $0x5] sm:$0x1] }
 0x10e   :  { %v151_v35 = vor.u32 %v150_v23, %v149_v19  ;;  %v154_v36 = vor.u32 %v153_v25, %v152_v21  ;;  %v142_v37 = vor.u32 %v141_v29, %v140_v27  ;;  %v145_v39 = vor.u32 %v144_v32, %v143_v30 }
 0x10f   :  { %v148_v40 = vor.u32 %v147_v34, %v146_v33  ;;  %v228_v24 = vlaneseq  ;;  %vm39_vm12 = vcmp.ne.f32.partialorder %v38_v26, 0.0  ;;  %v367_v31 = vmov 0  }
 0x110   :  { %v164_v41 = vsel %vm158_vm4, %v151_v35, 920167782  ;;  %v168_v42 = vsel %vm158_vm4, %v154_v36, 1326507024  ;;  %v163_v44 = vsel %vm155_vm5, %v142_v37, %v145_v39  ;;  %v159_v47 = vsel %vm155_vm5, %v139_v38, %v142_v37 }
 0x111   :  { %v160_v43 = vsel %vm158_vm4, %v148_v40, 2102212464  ;;  %v165_v45 = vsel %vm157_vm7, %v148_v40, %v164_v41  ;;  %v167_v46 = vsel %vm155_vm5, %v145_v39, %v148_v40  ;;  %v169_v50 = vsel %vm157_vm7, %v151_v35, %v168_v42 }
 0x112   :  { %v161_v48 = vsel %vm157_vm7, %v145_v39, %v160_v43  ;;  %v166_v49 = vsel %vm156_vm6, %v163_v44, %v165_v45  ;;  %v170_v51 = vsel %vm156_vm6, %v167_v46, %v169_v50  ;;  %v229_v28 = vshrl.u32 %v228_v24, 7 }
 0x113   :  { %v414_v52 = vmul.u32.u64.low %v171_v22, %v166_v49  ;;  %v415_v53 = vmul.u32.u64.high %v171_v22, %v166_v49, %v414_v52  ;;  %v417_v54 = vmul.u32.u64.low %v171_v22, %v170_v51  ;;  %v418_v55 = vmul.u32.u64.high %v171_v22, %v170_v51, %v417_v54 }
 0x114   :  { %v162_v56 = vsel %vm156_vm6, %v159_v47, %v161_v48  ;;  %v230_v30 = vsub.s32 0, %v229_v28  ;;  %v227_v32 = vsel %vm39_vm12, 1, %v367_v31 }
 0x115   :  { %v181_v57 = vadd.s32 1, %v415_v53  ;;  %v178_v58 = vmul.u32 %v171_v22, %v162_v56  ;;  %vm180_vm8 = vc.u32 %v418_v55, %v414_v52  ;;  %v179_v7 = vadd.s32 %v414_v52, %v418_v55 }
 0x116   :  { %v231_v35 = vrot.slane %v227_v32, %v230_v30 }
 0x117   :  { %v182_v59 = vsel %vm180_vm8, %v181_v57, %v415_v53 }
 0x118   :  { %v183_v60 = vadd.s32 %v182_v59, %v178_v58  ;;  %vm232_vm0 = vcmp.eq.s32.totalorder %v231_v35, 1 }
 0x11a   :  { %v184_v61 = vadd.s32 536870912, %v183_v60 }
 0x11c   :  { %v185_v62 = vshrl.u32 %v184_v61, 30 }
 0x11e   :  { %v186_v63 = vshll.u32 %v185_v62, 30  ;;  %v209_v20 = vsub.s32 4, %v185_v62 }
 0x120   :  { %v187_v0 = vsub.s32 %v183_v60, %v186_v63  ;;  %v210_v23 = vsel %vm125_vm10, %v209_v20, %v185_v62 }
 0x121   :  { %v212_v27 = vsel %vm124_vm11, 0, %v210_v23 }
 0x122   :  { %v189_v1 = vsub.s32 0, %v187_v0  ;;  %v216_v29 = vadd.s32 3, %v212_v27 }
 0x124   :  { %v255_v2 = vmin.u32 %v189_v1, %v187_v0  ;;  %v217_v33 = vand.u32 3, %v216_v29 }
 0x126   :  { %v191_v3 = vclz %v255_v2  ;;  %vm222_vm13 = vcmp.eq.s32.totalorder %v217_v33, 2  ;;  %vm219_vm14 = vcmp.eq.s32.totalorder %v217_v33, 0  ;;  %vm218_vm15 = vcmp.lt.s32.totalorder %v217_v33, 2 }
 0x128   :  { %v256_v4 = vadd.s32 4294967294, %v191_v3 }
 0x12a   :  { %vm257_vm9 = vcmp.lt.s32.totalorder %v256_v4, 0 }
 0x12b   :  { %v194_v6 = vsel %vm257_vm9, 0, %v256_v4 }
 0x12c   :  { %v195_v9 = vsub.s32 32, %v194_v6  ;;  %v199_v10 = vsub.s32 4294967266, %v194_v6  ;;  %v196_v11 = vshll.u32 %v187_v0, %v194_v6 }
 0x12e   :  { %v197_v12 = vshrl.u32 %v179_v7, %v195_v9  ;;  %v200_v13 = vadd.s32 127, %v199_v10 }
 0x130   :  { %v198_v14 = vor.u32 %v197_v12, %v196_v11  ;;  %v201_v15 = vshll.u32 %v200_v13, 23 }
 0x132   :  { %v202_v16 = vor.u32 4788187, %v201_v15  ;;  %v205_v18 = vcvt.s32.f32 %v198_v14 }
 0x134   :  { %v203_v17 = vand.u32 2147483647, %v202_v16 }
 0x136   :  { %v206_v19 = vmul.f32 %v205_v18, %v203_v17 }
 0x138   :  { %v207_v21 = vxor.u32 2147483648, %v206_v19 }
 0x13a   :  { %v208_v22 = vsel %vm125_vm10, %v207_v21, %v206_v19 }
 0x13b   :  { %v211_v25 = vsel %vm124_vm11, %v408_v5, %v208_v22 }
 0x13c   :  { %281 = vcosq.f32 %v211_v25 }
 0x13d   :  { %283 = vsinq.f32 %v211_v25 }
 0x146   :  { %v282_v34 = vpop.eup %281 }
 0x147   :  { %v284_v36 = vpop.eup %283  ;;  %v223_v8 = vxor.u32 2147483648, %v282_v34 }
 0x148   :  { %v220_v37 = vxor.u32 2147483648, %v284_v36 }
 0x149   :  { %v224_v38 = vsel %vm222_vm13, %v223_v8, %v284_v36 }
 0x14a   :  { %v221_v39 = vsel %vm219_vm14, %v282_v34, %v220_v37 }
 0x14b   :  { %v225_v40 = vsel %vm218_vm15, %v221_v39, %v224_v38 }
 0x14c   :  { %v226_v41 = vsel %vm215_vm1, nan, %v225_v40 }
 0x14d   :  { %v233_v42 = vsel %vm232_vm0, %v226_v41, %v408_v5 }
 0x14e   :  { %234 = vst [vmem:[#allocation7] sm:$0xf] %v233_v42 }
 0x14f   :  { %340 = shalt.err (!%p337_p6)
}
 0x150   :  { %s341_s8 = scalar_lea.hbm %s444_s2, 64 }
 0x151   :  { %p342_p7 = scmp.ne.s32.totalorder %s444_s2, %s341_s8  ;;  %p345_p8 = scmp.lt.u32.totalorder %s341_s8, %s444_s2 }
 0x153   :  { %p347_p9 = pnand %p345_p8, %p342_p7 }
 0x155   :  { %350 = shalt.err (!%p347_p9)
}
 0x156   :  { %244 = dma.vmem_to_hbm [thread:$0]  %s242_s4, 64, %s444_s2, [#allocation4]  }
 0x157   :  { %355 = dma.done.wait [#allocation4], 64  }
 0x158   :  { %356 = vsyncadd [#allocation4], 4294967232 }
 0x159   :  { %248 = vsyncpa [#allocation3], 1 }
 0x15a   :  { %249 = vsyncpa [#allocation6], 1 }
 0x15b   :  { %250 = vsyncpa [#allocation4], 1 }

</bundles_post_ra>
